<compile_context>
chip_gen: v7x
topology: tpu7x:2x2x1
jax: 0.10.0
libtpu: 0.0.40
codegen_flags: <defaults>
</compile_context>

<pallas_src>
import functools

import jax
import jax.numpy as jnp
from jax import lax
from jax.experimental import pallas as pl
from jax.experimental.pallas import tpu as pltpu

# TODO(synk): `T1` and `eps` are module-level constants that are not defined in the
# provided spec; standard NT-Xent defaults are used here.
T1 = 0.5
EPS = 1e-8

_LANE = 128       # lane width: feature dim padded to a multiple of this
_ROW_TILE = 256   # q rows processed per grid step (multiple of 8 and of 128)


def _round_up(x, m):
    return ((x + m - 1) // m) * m


def _contrastive_kernel(q_ref, k_ref, out_ref,
                        acc_diag, acc_rowsum, acc_colsum,
                        *, batch, tile_rows, inv_temp, eps):
    t = pl.program_id(0)
    tb, _ = q_ref.shape
    bp = k_ref.shape[0]

    @pl.when(t == 0)
    def _():
        acc_diag[...] = jnp.zeros_like(acc_diag)
        acc_rowsum[...] = jnp.zeros_like(acc_rowsum)
        acc_colsum[...] = jnp.zeros_like(acc_colsum)

    q = q_ref[...]
    k = k_ref[...]

    # F.normalize(x, dim=1): x / max(||x||, 1e-12).  Zero-padded rows stay zero.
    qn = q * lax.rsqrt(jnp.maximum(jnp.sum(q * q, axis=-1, keepdims=True), 1e-24))
    kn = k * lax.rsqrt(jnp.maximum(jnp.sum(k * k, axis=-1, keepdims=True), 1e-24))

    # S[i, j] = qn_i . kn_j  — contract the feature dim of both (no explicit transpose).
    s = lax.dot_general(qn, kn, (((1,), (1,)), ((), ())),
                        preferred_element_type=jnp.float32)          # (tb, bp)

    e = jnp.exp(s * inv_temp)

    col = lax.broadcasted_iota(jnp.int32, (tb, bp), 1)               # k index
    row = t * tile_rows + lax.broadcasted_iota(jnp.int32, (tb, bp), 0)  # global q index
    valid = (col < batch) & (row < batch)
    e = jnp.where(valid, e, 0.0)
    is_diag = (col == row) & (row < batch)

    rowsum = jnp.sum(e, axis=-1, keepdims=True)                      # (tb, 1)

    # Scatter per-row quantities to their global column position and reduce over
    # sublanes, keeping the accumulators lane-dense (1, bp) vectors.
    acc_diag[...] += jnp.sum(jnp.where(is_diag, e, 0.0), axis=0, keepdims=True)
    acc_rowsum[...] += jnp.sum(jnp.where(is_diag, rowsum, 0.0), axis=0, keepdims=True)
    acc_colsum[...] += jnp.sum(e, axis=0, keepdims=True)

    @pl.when(t == pl.num_programs(0) - 1)
    def _():
        lane_valid = lax.broadcasted_iota(jnp.int32, (1, bp), 1) < batch
        d = jnp.where(lane_valid, acc_diag[...], 1.0)
        rs = jnp.where(lane_valid, acc_rowsum[...], 1.0)
        cs = jnp.where(lane_valid, acc_colsum[...], 1.0)
        terms = -jnp.log(d / rs + eps) - jnp.log(d / cs + eps)
        out_ref[0] = jnp.sum(jnp.where(lane_valid, terms, 0.0)) / batch


def self_contrastive_loss(q, k, temperature=T1, eps=EPS):
    """q, k: (B, D) embedding batches. Returns the scalar contrastive loss (f32)."""
    assert q.ndim == 2 and q.shape == k.shape
    b, d = q.shape
    dp = _round_up(d, _LANE)
    if b <= _ROW_TILE:
        tile_rows = _round_up(b, 8)
        bp = tile_rows
    else:
        tile_rows = _ROW_TILE
        bp = _round_up(b, _ROW_TILE)

    def pad(x):
        x = x.astype(jnp.float32)
        if (bp, dp) != (b, d):
            x = jnp.pad(x, ((0, bp - b), (0, dp - d)))
        return x

    qp, kp = pad(q), pad(k)
    grid = (bp // tile_rows,)

    kernel = functools.partial(
        _contrastive_kernel, batch=b, tile_rows=tile_rows,
        inv_temp=float(1.0 / temperature), eps=float(eps))

    cp_cls = getattr(pltpu, "CompilerParams", None)
    compiler_params = (
        cp_cls(dimension_semantics=("arbitrary",),
               vmem_limit_bytes=48 * 1024 * 1024)
        if cp_cls is not None else None)

    out = pl.pallas_call(
        kernel,
        out_shape=jax.ShapeDtypeStruct((1,), jnp.float32),
        grid=grid,
        in_specs=[
            pl.BlockSpec((tile_rows, dp), lambda t: (t, 0)),   # streamed q row tiles
            pl.BlockSpec((bp, dp), lambda t: (0, 0)),          # k resident (constant block)
        ],
        out_specs=pl.BlockSpec(memory_space=pltpu.SMEM),       # single f32 scalar
        scratch_shapes=[
            pltpu.VMEM((1, bp), jnp.float32),   # exp(S[i,i]/T) scattered by column
            pltpu.VMEM((1, bp), jnp.float32),   # row sums     scattered by column
            pltpu.VMEM((1, bp), jnp.float32),   # column sums  accumulated over tiles
        ],
        compiler_params=compiler_params,
    )(qp, kp)
    return out[0]


# ---------------- pure-JAX reference (mirrors the torch forward, for verification) ----------------
def _ref_self_contrastive_loss(q, k, temperature=T1, eps=EPS):
    q = q.astype(jnp.float32)
    k = k.astype(jnp.float32)

    def l2norm(x):
        n = jnp.sqrt(jnp.sum(x * x, axis=1, keepdims=True))
        return x / jnp.maximum(n, 1e-12)

    qn, kn = l2norm(q), l2norm(k)
    rep = jnp.concatenate([qn, kn], axis=0)
    norms = jnp.sqrt(jnp.sum(rep * rep, axis=1))
    sim = (rep @ rep.T) / (jnp.maximum(norms[:, None], 1e-8) * jnp.maximum(norms[None, :], 1e-8))

    b = q.shape[0]
    sim_qk = jnp.diagonal(sim, offset=b)
    sim_kq = jnp.diagonal(sim, offset=-b)
    neg_mask = 1.0 - jnp.eye(b, dtype=jnp.float32)

    nom_qk = jnp.exp(sim_qk / temperature)
    den_qk = nom_qk + jnp.sum(neg_mask * jnp.exp(sim[:b, b:] / temperature), axis=1)
    nom_kq = jnp.exp(sim_kq / temperature)
    den_kq = nom_kq + jnp.sum(neg_mask * jnp.exp(sim[b:, :b] / temperature), axis=1)

    loss_qk = jnp.sum(-jnp.log(nom_qk / den_qk + eps)) / b
    loss_kq = jnp.sum(-jnp.log(nom_kq / den_kq + eps)) / b
    return loss_qk + loss_kq


if __name__ == "__main__":
    key = jax.random.PRNGKey(0)
    k1, k2 = jax.random.split(key)
    B, D = 8, 32                                  # small shapes: batch=8, hidden=32
    q = jax.random.normal(k1, (B, D), jnp.float32)
    kk = jax.random.normal(k2, (B, D), jnp.float32)

    loss = self_contrastive_loss(q, kk)
    jax.block_until_ready(loss)
    ref = _ref_self_contrastive_loss(q, kk)
    assert jnp.allclose(loss, ref, rtol=1e-3, atol=1e-3), (loss, ref)

    # Second check: unaligned sizes exercising the multi-tile / masked-lane path.
    k3, k4 = jax.random.split(jax.random.PRNGKey(1))
    B2, D2 = 300, 200                              # -> Bp=512, two row tiles
    q2 = jax.random.normal(k3, (B2, D2), jnp.float32)
    kk2 = jax.random.normal(k4, (B2, D2), jnp.float32)
    loss2 = self_contrastive_loss(q2, kk2)
    jax.block_until_ready(loss2)
    ref2 = _ref_self_contrastive_loss(q2, kk2)
    assert jnp.allclose(loss2, ref2, rtol=1e-3, atol=1e-3), (loss2, ref2)

    print("KERNEL_OK")
</pallas_src>

<mosaic_0001>
module attributes {stable_mosaic.version = 11 : i64} {
  func.func @_contrastive_kernel(%arg0: i32, %arg1: memref<8x128xf32, #tpu.memory_space<vmem>>, %arg2: memref<8x128xf32, #tpu.memory_space<vmem>>, %arg3: memref<1xf32, #tpu.memory_space<smem>>, %arg4: memref<1x8xf32, #tpu.memory_space<vmem>>, %arg5: memref<1x8xf32, #tpu.memory_space<vmem>>, %arg6: memref<1x8xf32, #tpu.memory_space<vmem>>) attributes {dimension_semantics = [#tpu.dimension_semantics<arbitrary>], iteration_bounds = array<i64: 1>, scalar_prefetch = 0 : i64, scratch_operands = 3 : i64, tpu.core_type = #tpu.core_type<tc>, window_params = [{transform_indices = @transform_0, window_bounds = array<i64: 8, 128>}, {pipeline_mode = #tpu.pipeline_mode<synchronous>, transform_indices = @transform_1, window_bounds = array<i64: 8, 128>}, {transform_indices = @transform_2, window_bounds = array<i64: 1>}]} {
    %c0_i32 = arith.constant 0 : i32
    %0 = arith.cmpi eq, %arg0, %c0_i32 : i32
    %1 = arith.extui %0 : i1 to i32
    %c0_i32_0 = arith.constant 0 : i32
    %2 = arith.cmpi ne, %1, %c0_i32_0 : i32
    scf.if %2 {
      %cst_33 = arith.constant 0.000000e+00 : f32
      %67 = vector.broadcast %cst_33 : f32 to vector<1x8xf32>
      %c0_34 = arith.constant 0 : index
      %c0_35 = arith.constant 0 : index
      %68 = vector.load %arg4[%c0_34, %c0_35] : memref<1x8xf32, #tpu.memory_space<vmem>>, vector<1x8xf32>
      tpu.vector_store %arg4[%c0_34, %c0_35], %67 {strides = array<i32>} : memref<1x8xf32, #tpu.memory_space<vmem>>, vector<1x8xf32>,
      %cst_36 = arith.constant 0.000000e+00 : f32
      %69 = vector.broadcast %cst_36 : f32 to vector<1x8xf32>
      %c0_37 = arith.constant 0 : index
      %c0_38 = arith.constant 0 : index
      %70 = vector.load %arg5[%c0_37, %c0_38] : memref<1x8xf32, #tpu.memory_space<vmem>>, vector<1x8xf32>
      tpu.vector_store %arg5[%c0_37, %c0_38], %69 {strides = array<i32>} : memref<1x8xf32, #tpu.memory_space<vmem>>, vector<1x8xf32>,
      %cst_39 = arith.constant 0.000000e+00 : f32
      %71 = vector.broadcast %cst_39 : f32 to vector<1x8xf32>
      %c0_40 = arith.constant 0 : index
      %c0_41 = arith.constant 0 : index
      %72 = vector.load %arg6[%c0_40, %c0_41] : memref<1x8xf32, #tpu.memory_space<vmem>>, vector<1x8xf32>
      tpu.vector_store %arg6[%c0_40, %c0_41], %71 {strides = array<i32>} : memref<1x8xf32, #tpu.memory_space<vmem>>, vector<1x8xf32>,
    } else {
    }
    %c0 = arith.constant 0 : index
    %c0_1 = arith.constant 0 : index
    %3 = vector.load %arg1[%c0, %c0_1] : memref<8x128xf32, #tpu.memory_space<vmem>>, vector<8x128xf32>
    %c0_2 = arith.constant 0 : index
    %c0_3 = arith.constant 0 : index
    %4 = vector.load %arg2[%c0_2, %c0_3] : memref<8x128xf32, #tpu.memory_space<vmem>>, vector<8x128xf32>
    %5 = arith.mulf %3, %3 : vector<8x128xf32>
    %cst = arith.constant dense<0.000000e+00> : vector<8xf32>
    %6 = vector.multi_reduction <add>, %5, %cst [1] : vector<8x128xf32> to vector<8xf32>
    %7 = vector.shape_cast %6 : vector<8xf32> to vector<8x1xf32>
    %cst_4 = arith.constant 1.000000e-24 : f32
    %8 = vector.broadcast %cst_4 : f32 to vector<8x1xf32>
    %9 = arith.maximumf %7, %8 : vector<8x1xf32>
    %10 = math.rsqrt %9 : vector<8x1xf32>
    %11 = vector.broadcast %10 : vector<8x1xf32> to vector<8x128xf32>
    %12 = arith.mulf %3, %11 : vector<8x128xf32>
    %13 = arith.mulf %4, %4 : vector<8x128xf32>
    %cst_5 = arith.constant dense<0.000000e+00> : vector<8xf32>
    %14 = vector.multi_reduction <add>, %13, %cst_5 [1] : vector<8x128xf32> to vector<8xf32>
    %15 = vector.shape_cast %14 : vector<8xf32> to vector<8x1xf32>
    %cst_6 = arith.constant 1.000000e-24 : f32
    %16 = vector.broadcast %cst_6 : f32 to vector<8x1xf32>
    %17 = arith.maximumf %15, %16 : vector<8x1xf32>
    %18 = math.rsqrt %17 : vector<8x1xf32>
    %19 = vector.broadcast %18 : vector<8x1xf32> to vector<8x128xf32>
    %20 = arith.mulf %4, %19 : vector<8x128xf32>
    %cst_7 = arith.constant dense<0.000000e+00> : vector<8x8xf32>
    %21 = tpu.matmul %12, %20, %cst_7 {dimension_numbers = #tpu.dot_dimension_numbers<[1], [1], [0], [0], [0, 0, 1, 0], [], []>} : vector<8x128xf32>, vector<8x128xf32>, vector<8x8xf32> -> vector<8x8xf32>
    %cst_8 = arith.constant 2.000000e+00 : f32
    %22 = vector.broadcast %cst_8 : f32 to vector<8x8xf32>
    %23 = arith.mulf %21, %22 : vector<8x8xf32>
    %24 = math.exp %23 : vector<8x8xf32>
    %25 = tpu.iota {dimensions = array<i32: 1>} : vector<8x8xi32>
    %c8_i32 = arith.constant 8 : i32
    %26 = arith.muli %arg0, %c8_i32 : i32
    %27 = tpu.iota {dimensions = array<i32: 0>} : vector<8x8xi32>
    %28 = vector.broadcast %26 : i32 to vector<8x8xi32>
    %29 = arith.addi %28, %27 : vector<8x8xi32>
    %c8_i32_9 = arith.constant 8 : i32
    %30 = vector.broadcast %c8_i32_9 : i32 to vector<8x8xi32>
    %31 = arith.cmpi slt, %25, %30 : vector<8x8xi32>
    %c8_i32_10 = arith.constant 8 : i32
    %32 = vector.broadcast %c8_i32_10 : i32 to vector<8x8xi32>
    %33 = arith.cmpi slt, %29, %32 : vector<8x8xi32>
    %34 = arith.andi %31, %33 : vector<8x8xi1>
    %cst_11 = arith.constant 0.000000e+00 : f32
    %35 = vector.broadcast %cst_11 : f32 to vector<8x8xf32>
    %36 = arith.select %34, %24, %35 : vector<8x8xi1>, vector<8x8xf32>
    %37 = arith.cmpi eq, %25, %29 : vector<8x8xi32>
    %c8_i32_12 = arith.constant 8 : i32
    %38 = vector.broadcast %c8_i32_12 : i32 to vector<8x8xi32>
    %39 = arith.cmpi slt, %29, %38 : vector<8x8xi32>
    %40 = arith.andi %37, %39 : vector<8x8xi1>
    %cst_13 = arith.constant dense<0.000000e+00> : vector<8xf32>
    %41 = vector.multi_reduction <add>, %36, %cst_13 [1] : vector<8x8xf32> to vector<8xf32>
    %42 = vector.shape_cast %41 : vector<8xf32> to vector<8x1xf32>
    %c0_14 = arith.constant 0 : index
    %c0_15 = arith.constant 0 : index
    %43 = vector.load %arg4[%c0_14, %c0_15] : memref<1x8xf32, #tpu.memory_space<vmem>>, vector<1x8xf32>
    %cst_16 = arith.constant 0.000000e+00 : f32
    %44 = vector.broadcast %cst_16 : f32 to vector<8x8xf32>
    %45 = arith.select %40, %36, %44 : vector<8x8xi1>, vector<8x8xf32>
    %cst_17 = arith.constant dense<0.000000e+00> : vector<8xf32>
    %46 = vector.multi_reduction <add>, %45, %cst_17 [0] : vector<8x8xf32> to vector<8xf32>
    %47 = vector.shape_cast %46 : vector<8xf32> to vector<1x8xf32>
    %48 = arith.addf %43, %47 : vector<1x8xf32>
    %c0_18 = arith.constant 0 : index
    %c0_19 = arith.constant 0 : index
    %49 = vector.load %arg4[%c0_18, %c0_19] : memref<1x8xf32, #tpu.memory_space<vmem>>, vector<1x8xf32>
    tpu.vector_store %arg4[%c0_18, %c0_19], %48 {strides = array<i32>} : memref<1x8xf32, #tpu.memory_space<vmem>>, vector<1x8xf32>,
    %c0_20 = arith.constant 0 : index
    %c0_21 = arith.constant 0 : index
    %50 = vector.load %arg5[%c0_20, %c0_21] : memref<1x8xf32, #tpu.memory_space<vmem>>, vector<1x8xf32>
    %cst_22 = arith.constant 0.000000e+00 : f32
    %51 = vector.shape_cast %42 : vector<8x1xf32> to vector<8x1xf32>
    %52 = vector.broadcast %51 : vector<8x1xf32> to vector<8x8xf32>
    %53 = vector.broadcast %cst_22 : f32 to vector<8x8xf32>
    %54 = arith.select %40, %52, %53 : vector<8x8xi1>, vector<8x8xf32>
    %cst_23 = arith.constant dense<0.000000e+00> : vector<8xf32>
    %55 = vector.multi_reduction <add>, %54, %cst_23 [0] : vector<8x8xf32> to vector<8xf32>
    %56 = vector.shape_cast %55 : vector<8xf32> to vector<1x8xf32>
    %57 = arith.addf %50, %56 : vector<1x8xf32>
    %c0_24 = arith.constant 0 : index
    %c0_25 = arith.constant 0 : index
    %58 = vector.load %arg5[%c0_24, %c0_25] : memref<1x8xf32, #tpu.memory_space<vmem>>, vector<1x8xf32>
    tpu.vector_store %arg5[%c0_24, %c0_25], %57 {strides = array<i32>} : memref<1x8xf32, #tpu.memory_space<vmem>>, vector<1x8xf32>,
    %c0_26 = arith.constant 0 : index
    %c0_27 = arith.constant 0 : index
    %59 = vector.load %arg6[%c0_26, %c0_27] : memref<1x8xf32, #tpu.memory_space<vmem>>, vector<1x8xf32>
    %cst_28 = arith.constant dense<0.000000e+00> : vector<8xf32>
    %60 = vector.multi_reduction <add>, %36, %cst_28 [0] : vector<8x8xf32> to vector<8xf32>
    %61 = vector.shape_cast %60 : vector<8xf32> to vector<1x8xf32>
    %62 = arith.addf %59, %61 : vector<1x8xf32>
    %c0_29 = arith.constant 0 : index
    %c0_30 = arith.constant 0 : index
    %63 = vector.load %arg6[%c0_29, %c0_30] : memref<1x8xf32, #tpu.memory_space<vmem>>, vector<1x8xf32>
    tpu.vector_store %arg6[%c0_29, %c0_30], %62 {strides = array<i32>} : memref<1x8xf32, #tpu.memory_space<vmem>>, vector<1x8xf32>,
    %c0_i32_31 = arith.constant 0 : i32
    %64 = arith.cmpi eq, %arg0, %c0_i32_31 : i32
    %65 = arith.extui %64 : i1 to i32
    %c0_i32_32 = arith.constant 0 : i32
    %66 = arith.cmpi ne, %65, %c0_i32_32 : i32
    scf.if %66 {
      %67 = tpu.iota {dimensions = array<i32: 1>} : vector<1x8xi32>
      %c8_i32_33 = arith.constant 8 : i32
      %68 = vector.broadcast %c8_i32_33 : i32 to vector<1x8xi32>
      %69 = arith.cmpi slt, %67, %68 : vector<1x8xi32>
      %c0_34 = arith.constant 0 : index
      %c0_35 = arith.constant 0 : index
      %70 = vector.load %arg4[%c0_34, %c0_35] : memref<1x8xf32, #tpu.memory_space<vmem>>, vector<1x8xf32>
      %cst_36 = arith.constant 1.000000e+00 : f32
      %71 = vector.broadcast %cst_36 : f32 to vector<1x8xf32>
      %72 = arith.select %69, %70, %71 : vector<1x8xi1>, vector<1x8xf32>
      %c0_37 = arith.constant 0 : index
      %c0_38 = arith.constant 0 : index
      %73 = vector.load %arg5[%c0_37, %c0_38] : memref<1x8xf32, #tpu.memory_space<vmem>>, vector<1x8xf32>
      %cst_39 = arith.constant 1.000000e+00 : f32
      %74 = vector.broadcast %cst_39 : f32 to vector<1x8xf32>
      %75 = arith.select %69, %73, %74 : vector<1x8xi1>, vector<1x8xf32>
      %c0_40 = arith.constant 0 : index
      %c0_41 = arith.constant 0 : index
      %76 = vector.load %arg6[%c0_40, %c0_41] : memref<1x8xf32, #tpu.memory_space<vmem>>, vector<1x8xf32>
      %cst_42 = arith.constant 1.000000e+00 : f32
      %77 = vector.broadcast %cst_42 : f32 to vector<1x8xf32>
      %78 = arith.select %69, %76, %77 : vector<1x8xi1>, vector<1x8xf32>
      %79 = arith.divf %72, %75 : vector<1x8xf32>
      %cst_43 = arith.constant 9.99999993E-9 : f32
      %80 = vector.broadcast %cst_43 : f32 to vector<1x8xf32>
      %81 = arith.addf %79, %80 : vector<1x8xf32>
      %82 = math.log %81 : vector<1x8xf32>
      %cst_44 = arith.constant 0.000000e+00 : f32
      %83 = vector.broadcast %cst_44 : f32 to vector<1x8xf32>
      %84 = arith.subf %83, %82 : vector<1x8xf32>
      %85 = arith.divf %72, %78 : vector<1x8xf32>
      %cst_45 = arith.constant 9.99999993E-9 : f32
      %86 = vector.broadcast %cst_45 : f32 to vector<1x8xf32>
      %87 = arith.addf %85, %86 : vector<1x8xf32>
      %88 = math.log %87 : vector<1x8xf32>
      %89 = arith.subf %84, %88 : vector<1x8xf32>
      %cst_46 = arith.constant 0.000000e+00 : f32
      %90 = vector.broadcast %cst_46 : f32 to vector<1x8xf32>
      %91 = arith.select %69, %89, %90 : vector<1x8xi1>, vector<1x8xf32>
      %92 = vector.shape_cast %91 : vector<1x8xf32> to vector<1x1x8xf32>
      %cst_47 = arith.constant dense<0.000000e+00> : vector<1xf32>
      %93 = vector.multi_reduction <add>, %92, %cst_47 [1, 2] : vector<1x1x8xf32> to vector<1xf32>
      %94 = vector.shape_cast %93 : vector<1xf32> to vector<1x1x1xf32>
      %95 = vector.extract %94[0, 0, 0] : f32 from vector<1x1x1xf32>
      %cst_48 = arith.constant 8.000000e+00 : f32
      %96 = arith.divf %95, %cst_48 : f32
      %c0_49 = arith.constant 0 : index
      %97 = memref.load %arg3[%c0_49] : memref<1xf32, #tpu.memory_space<smem>>
      memref.store %96, %arg3[%c0_49] : memref<1xf32, #tpu.memory_space<smem>>
    } else {
    }
    return
  }
  func.func @transform_0(%arg0: i32) -> (i32, i32) {
    %c0_i32 = arith.constant 0 : i32
    %c0_i32_0 = arith.constant 0 : i32
    return %arg0, %c0_i32 : i32, i32
  }
  func.func @transform_1(%arg0: i32) -> (i32, i32) {
    %c0_i32 = arith.constant 0 : i32
    %c0_i32_0 = arith.constant 0 : i32
    %c0_i32_1 = arith.constant 0 : i32
    return %c0_i32, %c0_i32_0 : i32, i32
  }
  func.func @transform_2(%arg0: i32) -> i32 {
    %c0_i32 = arith.constant 0 : i32
    %c0_i32_0 = arith.constant 0 : i32
    return %c0_i32 : i32
  }
}

</mosaic_0001>

<bundles_post_ra>
// kernel: tpu_custom_call.1
= control target key start
LH: loop header
LB: loop body
LE: loop exit
PB: predicated region body
PF: predicated region fallthrough
CT: control target
= control target key end

     0   :  { %7 = vsyncpa [#allocation6], 0  ;;  %s404_s0 = inlined_call_operand.hbm [shape: f32[8,128], index: 0, kind: input, shape index: {}]   ;;  %s405_s1 = inlined_call_operand.hbm [shape: f32[8,128], index: 1, kind: input, shape index: {}]   ;;  %s406_s2 = inlined_call_operand.hbm [shape: f32[1], index: 2, kind: output, shape index: {}]  }
   0x1   :  { %8 = vsyncpa [#allocation9], 0 }
   0x2   :  { %9 = vsyncpa [#allocation7], 0  ;;  %s320_s9 = smov [#allocation5]   ;;  %s321_s11 = smov [#allocation8]  }
   0x3   :  { %s16_s10 = sshll.u32 %s320_s9, 4  ;;  %s26_s12 = sshll.u32 %s321_s11, 4  ;;  %s17_s10 = int_to_ptr.vmem [resolvable:$true] %s16_s10  ;;  %s27_s12 = int_to_ptr.vmem [resolvable:$true] %s26_s12 }
   0x4   :  { %s260_s15 = scalar_lea.hbm %s404_s0, 128 }
   0x5   :  { %p261_p0 = scmp.ne.s32.totalorder %s404_s0, %s260_s15  ;;  %p264_p1 = scmp.lt.u32.totalorder %s260_s15, %s404_s0 }
   0x7   :  { %p266_p2 = pnand %p264_p1, %p261_p0 }
   0x9   :  { %269 = shalt.err (!%p266_p2)
}
   0xa   :  { %s270_s20 = scalar_lea.vmem %s17_s10, 128  ;;  %p275_p4 = scmp.lt.s32.totalorder %s17_s10, %s17_s10 }
   0xb   :  { %p271_p3 = scmp.ne.s32.totalorder %s17_s10, %s270_s20  ;;  %p276_p5 = scmp.lt.s32.totalorder %s270_s20, %s270_s20 }
   0xd   :  { %p277_p6 = por %p276_p5, %p275_p4 }
   0xf   :  { %p278_p7 = pnand %p277_p6, %p271_p3 }
  0x11   :  { %281 = shalt.err (!%p278_p7)
}
  0x12   :  { %19 = dma.hbm_to_vmem [thread:$0]  %s404_s0, 128, %s17_s10, [#allocation6]  }
  0x13   :  { %s282_s25 = scalar_lea.hbm %s405_s1, 128 }
  0x14   :  { %p283_p8 = scmp.ne.s32.totalorder %s405_s1, %s282_s25  ;;  %p286_p9 = scmp.lt.u32.totalorder %s282_s25, %s405_s1 }
  0x16   :  { %p288_p10 = pnand %p286_p9, %p283_p8 }
  0x18   :  { %291 = shalt.err (!%p288_p10)
}
  0x19   :  { %s292_s30 = scalar_lea.vmem %s27_s12, 128  ;;  %p297_p12 = scmp.lt.s32.totalorder %s27_s12, %s27_s12 }
  0x1a   :  { %p293_p11 = scmp.ne.s32.totalorder %s27_s12, %s292_s30  ;;  %p298_p13 = scmp.lt.s32.totalorder %s292_s30, %s292_s30 }
  0x1c   :  { %p299_p0 = por %p298_p13, %p297_p12 }
  0x1e   :  { %p300_p1 = pnand %p299_p0, %p293_p11 }
  0x20   :  { %303 = shalt.err (!%p300_p1)
}
  0x21   :  { %29 = dma.hbm_to_vmem [thread:$0]  %s405_s1, 128, %s27_s12, [#allocation9]  }
  0x22   :  { %314 = dma.done.wait [#allocation6], 128  }
  0x23   :  { %315 = vsyncadd [#allocation6], 4294967168 }
  0x24   :  { %316 = dma.done.wait [#allocation9], 128  }
  0x25   :  { %317 = vsyncadd [#allocation9], 4294967168  ;;  %v45_v0 = vld [vmem:[#allocation8] sm:$0xff]  ;;  %v44_v1 = vld [vmem:[#allocation5] sm:$0xff]  ;;  %vm40_vm0 = vcmask 57344   ;;  %v322_v4 = vmov 0.0   ;;  %v131_v17 = vlaneseq }
  0x26   :  { %v52_v2 = vmul.f32 %v45_v0, %v45_v0  ;;  %v46_v3 = vmul.f32 %v44_v1, %v44_v1  ;;  %41 = vst.msk [vmem:[#allocation2] sm:$0x1] %vm40_vm0, %v322_v4  ;;  %42 = vst.msk [vmem:[#allocation3] sm:$0x1] %vm40_vm0, %v322_v4  ;;  %234 = vmatprep.subr.mxu0 %v322_v4  ;;  %vm323_vm1 = vmmov 0   ;;  %vm144_vm3 = vcmask 64512  }
  0x27   :  { %43 = vst.msk [vmem:[#allocation4] sm:$0x1] %vm40_vm0, %v322_v4  ;;  %236 = vmatprep.mubr.msk.f32.mxu0 %vm323_vm1, %v322_v4  ;;  %v367_v18 = vand.u32 127, %v131_v17  ;;  %v135_v19 = vshrl.u32 %v131_v17, 7  ;;  %s304_s7 = scalar_lea.hbm %s406_s2, 16 }
  0x28   :  { %53 = vadd.xlane.f32.xlu0 %v52_v2  ;;  %p305_p2 = scmp.ne.s32.totalorder %s406_s2, %s304_s7  ;;  %p308_p3 = scmp.lt.u32.totalorder %s304_s7, %s406_s2 }
  0x29   :  { %vm138_vm2 = vcmp.lt.s32.totalorder %v367_v18, 8  ;;  %vm142_vm4 = vcmp.eq.s32.totalorder %v367_v18, %v135_v19 }
  0x2a   :  { %p310_p4 = pnand %p308_p3, %p305_p2 }
  0x2c   :  { %47 = vadd.xlane.f32.xlu0 %v46_v3 }
  0x2d   :  { %v148_v37 = vld [vmem:[#allocation2] sm:$0x1]  ;;  %v160_v49 = vld [vmem:[#allocation3] sm:$0x1] }
  0x2e   :  { %v171_v34 = vld [vmem:[#allocation4] sm:$0x1] }
  0xb5   :  { %v54_v5 = vpop.xlane.xlu0 %53 }
  0xb6   :  { %v55_v6 = vmax.f32 %v54_v5, 1e-24 }
  0xb8   :  { %246 = vrsqrt.f32 %v55_v6 }
  0xb9   :  { %v48_v7 = vpop.xlane.xlu0 %47 }
  0xba   :  { %v49_v8 = vmax.f32 %v48_v7, 1e-24 }
  0xbc   :  { %248 = vrsqrt.f32 %v49_v8 }
  0xc2   :  { %v247_v9 = vpop.eup %246 }
  0xc3   :  { %v57_v10 = vmul.f32 %v247_v9, %v45_v0 }
  0xc5   :  { %235 = vmatpush3.xpose.msra.mxu0 %v57_v10 }
  0xc6   :  { %v249_v11 = vpop.eup %248 }
  0xc7   :  { %v51_v12 = vmul.f32 %v249_v11, %v44_v1 }
  0xc9   :  { %237 = vmatmul.mubr.f32.vlgmr.msra.gmra.mrb[0].mxu0 %v51_v12 }
 0x19c   :  { %v124_v13 = vpop.f32.mrb[0].mxu0 }
 0x19d   :  { %v128_v14 = vmul.f32 2.0, %v124_v13  ;;  %v238_v15 = vpop.f32.mrb[1].mxu0 }
 0x19f   :  { %v129_v16 = vmul.f32 1.442695, %v128_v14 }
 0x1a1   :  { %250 = vpow2.f32 %v129_v16 }
 0x1ab   :  { %v251_v20 = vpop.eup %250 }
 0x1ac   :  { %v141_v21 = vsel %vm138_vm2, %v251_v20, 0.0 }
 0x1ad   :  { %v145_v22 = vsel %vm144_vm3, %v141_v21, 0.0  ;;  %v149_v23 = vsel %vm142_vm4, %v141_v21, 0.0 }
 0x1ae   :  { %146 = vadd.xlane.f32.xlu1 %v145_v22  ;;  %v172_v24 = vrot.slane %v145_v22, 4  ;;  %v150_v25 = vsel %vm144_vm3, %v149_v23, 0.0 }
 0x1af   :  { %v151_v26 = vrot.slane %v150_v25, 4 }
 0x1b0   :  { %v173_v27 = vadd.f32 %v172_v24, %v145_v22 }
 0x1b1   :  { %v152_v28 = vadd.f32 %v151_v26, %v150_v25 }
 0x1b2   :  { %v174_v29 = vrot.slane %v173_v27, 2 }
 0x1b3   :  { %v153_v30 = vrot.slane %v152_v28, 2 }
 0x1b4   :  { %v175_v31 = vadd.f32 %v174_v29, %v173_v27 }
 0x1b5   :  { %v154_v32 = vadd.f32 %v153_v30, %v152_v28 }
 0x1b6   :  { %v176_v33 = vrot.slane %v175_v31, 1 }
 0x1b7   :  { %v155_v35 = vrot.slane %v154_v32, 1 }
 0x1b8   :  { %v177_v36 = vadd.f32 %v176_v33, %v175_v31 }
 0x1b9   :  { %v156_v38 = vadd.f32 %v155_v35, %v154_v32 }
 0x1ba   :  { %v178_v39 = vadd.f32 %v177_v36, %v171_v34 }
 0x1bb   :  { %v157_v40 = vadd.f32 %v156_v38, %v148_v37 }
 0x1bc   :  { %179 = vst.msk [vmem:[#allocation4] sm:$0x1] %vm40_vm0, %v178_v39 }
 0x1bd   :  { %159 = vst.msk [vmem:[#allocation2] sm:$0x1] %vm40_vm0, %v157_v40 }
 0x1c3   :  { %v187_v50 = vld [vmem:[#allocation4] sm:$0x1] }
 0x1c4   :  { %v188_v53 = vsel %vm138_vm2, %v187_v50, 1.0  ;;  %v183_v56 = vld [vmem:[#allocation2] sm:$0x1] }
 0x1c5   :  { %252 = vrcp.f32 %v188_v53  ;;  %v184_v58 = vsel %vm138_vm2, %v183_v56, 1.0 }
 0x1cf   :  { %v253_v57 = vpop.eup %252 }
 0x1d0   :  { %v196_v59 = vmul.f32 %v253_v57, %v184_v58 }
 0x1d2   :  { %v197_v61 = vadd.f32 1e-08, %v196_v59 }
 0x23b   :  { %v147_v41 = vpop.xlane.xlu1 %146 }
 0x23c   :  { %v161_v42 = vsel %vm142_vm4, %v147_v41, 0.0 }
 0x23d   :  { %v162_v43 = vsel %vm144_vm3, %v161_v42, 0.0 }
 0x23e   :  { %v163_v44 = vrot.slane %v162_v43, 4 }
 0x240   :  { %v164_v45 = vadd.f32 %v163_v44, %v162_v43 }
 0x242   :  { %v165_v46 = vrot.slane %v164_v45, 2 }
 0x244   :  { %v166_v47 = vadd.f32 %v165_v46, %v164_v45 }
 0x246   :  { %v167_v48 = vrot.slane %v166_v47, 1 }
 0x248   :  { %v168_v51 = vadd.f32 %v167_v48, %v166_v47 }
 0x24a   :  { %v169_v52 = vadd.f32 %v168_v51, %v160_v49 }
 0x24c   :  { %170 = vst.msk [vmem:[#allocation3] sm:$0x1] %vm40_vm0, %v169_v52 }
 0x253   :  { %v185_v54 = vld [vmem:[#allocation3] sm:$0x1] }
 0x254   :  { %v186_v55 = vsel %vm138_vm2, %v185_v54, 1.0 }
 0x255   :  { %254 = vrcp.f32 %v186_v55 }
 0x256   :  { %256 = vlog2.f32 %v197_v61 }
 0x25f   :  { %v255_v60 = vpop.eup %254 }
 0x260   :  { %v190_v62 = vmul.f32 %v255_v60, %v184_v58  ;;  %v257_v0 = vpop.eup %256 }
 0x261   :  { %v199_v4 = vmul.f32 0.6931472, %v257_v0 }
 0x262   :  { %v191_v63 = vadd.f32 1e-08, %v190_v62 }
 0x264   :  { %258 = vlog2.f32 %v191_v63 }
 0x26e   :  { %v259_v1 = vpop.eup %258 }
 0x26f   :  { %v193_v2 = vmul.f32 0.6931472, %v259_v1 }
 0x271   :  { %v194_v3 = vsub.f32 0.0, %v193_v2 }
 0x273   :  { %v200_v5 = vsub.f32 %v194_v3, %v199_v4 }
 0x275   :  { %v201_v6 = vsel %vm138_vm2, %v200_v5, 0.0 }
 0x276   :  { %v202_v7 = vsel %vm40_vm0, %v201_v6, 0.0 }
 0x277   :  { %203 = vadd.xlane.f32.xlu1 %v202_v7 }
 0x304   :  { %v204_v8 = vpop.xlane.xlu1 %203 }
 0x305   :  { %v205_v9 = vrot.slane %v204_v8, 4 }
 0x307   :  { %v206_v10 = vadd.f32 %v205_v9, %v204_v8 }
 0x309   :  { %v207_v11 = vrot.slane %v206_v10, 2 }
 0x30b   :  { %v208_v12 = vadd.f32 %v207_v11, %v206_v10 }
 0x30d   :  { %v209_v13 = vrot.slane %v208_v12, 1 }
 0x30f   :  { %v210_v14 = vadd.f32 %v209_v13, %v208_v12 }
 0x311   :  { %239 = vpush %v210_v14 }
 0x342   :  { %s240_s1 = spop %239 }
 0x343   :  { %s214_s4 = smul.f32 0.125, %s240_s1 }
 0x345   :  { %216 = sst [smem:[#allocation10]] %s214_s4 }
 0x346   :  { %313 = shalt.err (!%p310_p4)
}
 0x347   :  { %s324_s12 = smov [#allocation10]  }
 0x348   :  { %224 = dma.smem_to_hbm %s324_s12, 16, %s406_s2, [#allocation7]  }
 0x349   :  { %318 = dma.done.wait [#allocation7], 16  }
 0x34a   :  { %319 = vsyncadd [#allocation7], 4294967280 }
 0x34b   :  { %228 = sfence }
 0x34c   :  { %229 = vsyncpa [#allocation6], 1 }
 0x34d   :  { %230 = vsyncpa [#allocation9], 1 }
 0x34e   :  { %231 = vsyncpa [#allocation7], 1 }

</bundles_post_ra>
